<compile_context>
chip_gen: v6e
topology: v6e:2x2x1
jax: 0.10.0
libtpu: 0.0.40
codegen_flags: <defaults>
</compile_context>

<pallas_src>
import jax
import jax.numpy as jnp
from jax.experimental import pallas as pl
from jax.experimental.pallas import tpu as pltpu

HIDDEN1 = 128   # fc1 output width (already lane-dense)
HIDDEN2 = 64    # fc2 logical output width
LANE = 128      # lane-padded width used for the hidden2 / fc3 intermediates


def mlp_softmax_kernel(x_ref, w1_ref, b1_ref, w2_ref, b2_ref, w3_ref, b3_ref,
                       out_ref):
    out_size = out_ref.shape[-1]

    # x arrives as f32; cast to bf16 in-kernel (VPU op, free in this regime).
    x = x_ref[...].astype(jnp.bfloat16)

    # fc1 + LeakyReLU(0.01), f32 accumulation.
    h1 = jnp.dot(x, w1_ref[...], preferred_element_type=jnp.float32) + b1_ref[...]
    h1 = jnp.where(h1 > 0, h1, 0.01 * h1)

    # Dropout(0.5) is identity in eval mode.
    # TODO(synk): training-mode dropout (RNG mask via pltpu.prng_*) not implemented.

    # fc2 (output padded 64 -> 128 with zero cols; LeakyReLU(0) = 0 so the pad
    # columns stay zero and the zero rows of w3 ignore them).
    h2 = jnp.dot(h1.astype(jnp.bfloat16), w2_ref[...],
                 preferred_element_type=jnp.float32) + b2_ref[...]
    h2 = jnp.where(h2 > 0, h2, 0.01 * h2)

    # fc3 (output padded to 128 lanes with zero weights / zero bias).
    logits = jnp.dot(h2.astype(jnp.bfloat16), w3_ref[...],
                     preferred_element_type=jnp.float32) + b3_ref[...]

    # Row-wise softmax in f32 on the real columns only; exact normalization.
    logits = logits[:, :out_size]
    m = jnp.max(logits, axis=1, keepdims=True)
    e = jnp.exp(logits - m)
    denom = jnp.sum(e, axis=1, keepdims=True)
    out_ref[...] = (e / denom).astype(out_ref.dtype)


def prepare_kernel_params(params):
    """Pad hidden layers to lane-dense 128-wide and cast weights to bf16.

    params: f32 dict with (in, out)-layout weights and (1, out) biases
            (i.e. PyTorch W transposed).
    """
    w1 = params["w1"].astype(jnp.bfloat16)                      # (in, 128)
    b1 = params["b1"].astype(jnp.float32)                       # (1, 128)

    # fc2: pad output 64 -> 128 with zero weights / zero bias.
    w2 = jnp.zeros((HIDDEN1, LANE), jnp.float32)
    w2 = w2.at[:, :HIDDEN2].set(params["w2"]).astype(jnp.bfloat16)
    b2 = jnp.zeros((1, LANE), jnp.float32).at[:, :HIDDEN2].set(params["b2"])

    # fc3: pad input 64 -> 128 (zero rows) and output out_size -> 128 (zero
    # cols, zero bias). Pad columns are sliced off before the softmax, so no
    # -1e30 trick is needed.
    out_size = params["w3"].shape[1]
    w3 = jnp.zeros((LANE, LANE), jnp.float32)
    w3 = w3.at[:HIDDEN2, :out_size].set(params["w3"]).astype(jnp.bfloat16)
    b3 = jnp.zeros((1, LANE), jnp.float32).at[:, :out_size].set(params["b3"])

    return dict(w1=w1, b1=b1, w2=w2, b2=b2, w3=w3, b3=b3)


def _pick_batch_tile(B):
    """>=2 grid steps once B > 512 (v7x megacore), Bt in the 512-1024 range."""
    if B <= 512:
        return B
    if B <= 8192:
        return 512
    return 1024


def multiclass_dnn_forward(x, kparams, out_size):
    """x: (B, input_size) f32.  kparams: output of prepare_kernel_params."""
    B, in_size = x.shape
    Bt = _pick_batch_tile(B)
    grid = (pl.cdiv(B, Bt),)

    # Weights/biases: constant index_map -> resident in VMEM, DMA'd once.
    resident = lambda a: pl.BlockSpec(a.shape, lambda i: (0, 0))

    weight_bytes = sum(int(a.size) * a.dtype.itemsize for a in kparams.values())
    cost = pl.CostEstimate(
        flops=2 * B * (in_size * HIDDEN1 + HIDDEN1 * LANE + LANE * LANE),
        transcendentals=B * out_size,
        bytes_accessed=B * (4 * in_size + 4 * out_size) + weight_bytes,
    )

    return pl.pallas_call(
        mlp_softmax_kernel,
        out_shape=jax.ShapeDtypeStruct((B, out_size), jnp.float32),
        grid=grid,
        in_specs=[
            pl.BlockSpec((Bt, in_size), lambda i: (i, 0)),
            resident(kparams["w1"]), resident(kparams["b1"]),
            resident(kparams["w2"]), resident(kparams["b2"]),
            resident(kparams["w3"]), resident(kparams["b3"]),
        ],
        out_specs=pl.BlockSpec((Bt, out_size), lambda i: (i, 0)),
        compiler_params=pltpu.CompilerParams(
            dimension_semantics=("parallel",)),
        cost_estimate=cost,
    )(x, kparams["w1"], kparams["b1"], kparams["w2"], kparams["b2"],
      kparams["w3"], kparams["b3"])


def init_params(key, input_size, output_size):
    """Deterministic synthetic parameters. PyTorch Linear stores W as (out,in);
    we store the transposed (in,out) layout the kernel expects."""
    k1, k2, k3, k4, k5, k6 = jax.random.split(key, 6)

    def lin(kw, kb, fan_in, fan_out):
        bound = 1.0 / jnp.sqrt(fan_in)
        w = jax.random.uniform(kw, (fan_in, fan_out), jnp.float32, -bound, bound)
        b = jax.random.uniform(kb, (1, fan_out), jnp.float32, -bound, bound)
        return w, b

    w1, b1 = lin(k1, k2, input_size, HIDDEN1)
    w2, b2 = lin(k3, k4, HIDDEN1, HIDDEN2)
    w3, b3 = lin(k5, k6, HIDDEN2, output_size)
    return dict(w1=w1, b1=b1, w2=w2, b2=b2, w3=w3, b3=b3)


def reference_forward(x, p):
    """Pure f32 reference (PyTorch eval-mode semantics)."""
    h1 = x @ p["w1"] + p["b1"]
    h1 = jnp.where(h1 > 0, h1, 0.01 * h1)
    h2 = h1 @ p["w2"] + p["b2"]
    h2 = jnp.where(h2 > 0, h2, 0.01 * h2)
    logits = h2 @ p["w3"] + p["b3"]
    return jax.nn.softmax(logits, axis=1)


def reference_forward_bf16(x, p):
    """Mirrors the kernel's numerics: bf16 matmul operands, f32 accumulation."""
    h1 = jnp.dot(x.astype(jnp.bfloat16), p["w1"].astype(jnp.bfloat16),
                 preferred_element_type=jnp.float32) + p["b1"]
    h1 = jnp.where(h1 > 0, h1, 0.01 * h1)
    h2 = jnp.dot(h1.astype(jnp.bfloat16), p["w2"].astype(jnp.bfloat16),
                 preferred_element_type=jnp.float32) + p["b2"]
    h2 = jnp.where(h2 > 0, h2, 0.01 * h2)
    logits = jnp.dot(h2.astype(jnp.bfloat16), p["w3"].astype(jnp.bfloat16),
                     preferred_element_type=jnp.float32) + p["b3"]
    return jax.nn.softmax(logits, axis=1)


if __name__ == "__main__":
    key = jax.random.PRNGKey(0)
    kx, kx2, kp = jax.random.split(key, 3)

    batch = 8
    input_size = 32
    output_size = 4

    x = jax.random.normal(kx, (batch, input_size), jnp.float32)
    params = init_params(kp, input_size, output_size)
    kparams = prepare_kernel_params(params)

    out = multiclass_dnn_forward(x, kparams, output_size)
    out = jax.block_until_ready(out)

    assert out.shape == (batch, output_size)

    # Tight check vs. a reference that mirrors the kernel's bf16/f32 numerics.
    ref_bf16 = reference_forward_bf16(x, params)
    assert jnp.allclose(out, ref_bf16, atol=5e-3, rtol=5e-3)

    # Looser check vs. the full-f32 PyTorch-semantics reference.
    ref_f32 = reference_forward(x, params)
    assert jnp.allclose(out, ref_f32, atol=2e-2, rtol=2e-2)

    # Exact normalization now -> rows sum to 1 to f32 precision.
    assert jnp.allclose(jnp.sum(out, axis=1), jnp.ones(batch), atol=1e-5)

    # Ragged / multi-tile path: B not a multiple of Bt=512 (2 grid steps,
    # masked writeback of the last tile's out-of-bounds rows).
    batch2 = 600
    x2 = jax.random.normal(kx2, (batch2, input_size), jnp.float32)
    out2 = jax.block_until_ready(multiclass_dnn_forward(x2, kparams, output_size))
    assert out2.shape == (batch2, output_size)
    ref2 = reference_forward_bf16(x2, params)
    assert jnp.allclose(out2, ref2, atol=5e-3, rtol=5e-3)
    assert jnp.allclose(jnp.sum(out2, axis=1), jnp.ones(batch2), atol=1e-5)

    print("KERNEL_OK")
</pallas_src>

<mosaic_0001>
module attributes {stable_mosaic.version = 11 : i64} {
  func.func @mlp_softmax_kernel(%arg0: i32, %arg1: memref<8x32xf32, #tpu.memory_space<vmem>>, %arg2: memref<32x128xbf16, #tpu.memory_space<vmem>>, %arg3: memref<1x128xf32, #tpu.memory_space<vmem>>, %arg4: memref<128x128xbf16, #tpu.memory_space<vmem>>, %arg5: memref<1x128xf32, #tpu.memory_space<vmem>>, %arg6: memref<128x128xbf16, #tpu.memory_space<vmem>>, %arg7: memref<1x128xf32, #tpu.memory_space<vmem>>, %arg8: memref<8x4xf32, #tpu.memory_space<vmem>>) attributes {dimension_semantics = [#tpu.dimension_semantics<parallel>], iteration_bounds = array<i64: 1>, scalar_prefetch = 0 : i64, scratch_operands = 0 : i64, tpu.core_type = #tpu.core_type<tc>, window_params = [{transform_indices = @transform_0, window_bounds = array<i64: 8, 32>}, {pipeline_mode = #tpu.pipeline_mode<synchronous>, transform_indices = @transform_1, window_bounds = array<i64: 32, 128>}, {pipeline_mode = #tpu.pipeline_mode<synchronous>, transform_indices = @transform_2, window_bounds = array<i64: 1, 128>}, {pipeline_mode = #tpu.pipeline_mode<synchronous>, transform_indices = @transform_3, window_bounds = array<i64: 128, 128>}, {pipeline_mode = #tpu.pipeline_mode<synchronous>, transform_indices = @transform_4, window_bounds = array<i64: 1, 128>}, {pipeline_mode = #tpu.pipeline_mode<synchronous>, transform_indices = @transform_5, window_bounds = array<i64: 128, 128>}, {pipeline_mode = #tpu.pipeline_mode<synchronous>, transform_indices = @transform_6, window_bounds = array<i64: 1, 128>}, {transform_indices = @transform_7, window_bounds = array<i64: 8, 4>}]} {
    %c0 = arith.constant 0 : index
    %c0_0 = arith.constant 0 : index
    %0 = vector.load %arg1[%c0, %c0_0] : memref<8x32xf32, #tpu.memory_space<vmem>>, vector<8x32xf32>
    %1 = arith.truncf %0 : vector<8x32xf32> to vector<8x32xbf16>
    %c0_1 = arith.constant 0 : index
    %c0_2 = arith.constant 0 : index
    %2 = vector.load %arg2[%c0_1, %c0_2] : memref<32x128xbf16, #tpu.memory_space<vmem>>, vector<32x128xbf16>
    %cst = arith.constant dense<0.000000e+00> : vector<8x128xf32>
    %3 = tpu.matmul %1, %2, %cst {dimension_numbers = #tpu.dot_dimension_numbers<[1], [0], [0], [1], [0, 0, 1, 1], [], []>} : vector<8x32xbf16>, vector<32x128xbf16>, vector<8x128xf32> -> vector<8x128xf32>
    %c0_3 = arith.constant 0 : index
    %c0_4 = arith.constant 0 : index
    %4 = vector.load %arg3[%c0_3, %c0_4] : memref<1x128xf32, #tpu.memory_space<vmem>>, vector<1x128xf32>
    %5 = vector.broadcast %4 : vector<1x128xf32> to vector<8x128xf32>
    %6 = arith.addf %3, %5 : vector<8x128xf32>
    %cst_5 = arith.constant 0.000000e+00 : f32
    %7 = vector.broadcast %cst_5 : f32 to vector<8x128xf32>
    %8 = arith.cmpf ogt, %6, %7 : vector<8x128xf32>
    %cst_6 = arith.constant 0.00999999977 : f32
    %9 = vector.broadcast %cst_6 : f32 to vector<8x128xf32>
    %10 = arith.mulf %9, %6 : vector<8x128xf32>
    %11 = arith.select %8, %6, %10 : vector<8x128xi1>, vector<8x128xf32>
    %12 = arith.truncf %11 : vector<8x128xf32> to vector<8x128xbf16>
    %c0_7 = arith.constant 0 : index
    %c0_8 = arith.constant 0 : index
    %13 = vector.load %arg4[%c0_7, %c0_8] : memref<128x128xbf16, #tpu.memory_space<vmem>>, vector<128x128xbf16>
    %cst_9 = arith.constant dense<0.000000e+00> : vector<8x128xf32>
    %14 = tpu.matmul %12, %13, %cst_9 {dimension_numbers = #tpu.dot_dimension_numbers<[1], [0], [0], [1], [0, 0, 1, 1], [], []>} : vector<8x128xbf16>, vector<128x128xbf16>, vector<8x128xf32> -> vector<8x128xf32>
    %c0_10 = arith.constant 0 : index
    %c0_11 = arith.constant 0 : index
    %15 = vector.load %arg5[%c0_10, %c0_11] : memref<1x128xf32, #tpu.memory_space<vmem>>, vector<1x128xf32>
    %16 = vector.broadcast %15 : vector<1x128xf32> to vector<8x128xf32>
    %17 = arith.addf %14, %16 : vector<8x128xf32>
    %cst_12 = arith.constant 0.000000e+00 : f32
    %18 = vector.broadcast %cst_12 : f32 to vector<8x128xf32>
    %19 = arith.cmpf ogt, %17, %18 : vector<8x128xf32>
    %cst_13 = arith.constant 0.00999999977 : f32
    %20 = vector.broadcast %cst_13 : f32 to vector<8x128xf32>
    %21 = arith.mulf %20, %17 : vector<8x128xf32>
    %22 = arith.select %19, %17, %21 : vector<8x128xi1>, vector<8x128xf32>
    %23 = arith.truncf %22 : vector<8x128xf32> to vector<8x128xbf16>
    %c0_14 = arith.constant 0 : index
    %c0_15 = arith.constant 0 : index
    %24 = vector.load %arg6[%c0_14, %c0_15] : memref<128x128xbf16, #tpu.memory_space<vmem>>, vector<128x128xbf16>
    %cst_16 = arith.constant dense<0.000000e+00> : vector<8x128xf32>
    %25 = tpu.matmul %23, %24, %cst_16 {dimension_numbers = #tpu.dot_dimension_numbers<[1], [0], [0], [1], [0, 0, 1, 1], [], []>} : vector<8x128xbf16>, vector<128x128xbf16>, vector<8x128xf32> -> vector<8x128xf32>
    %c0_17 = arith.constant 0 : index
    %c0_18 = arith.constant 0 : index
    %26 = vector.load %arg7[%c0_17, %c0_18] : memref<1x128xf32, #tpu.memory_space<vmem>>, vector<1x128xf32>
    %27 = vector.broadcast %26 : vector<1x128xf32> to vector<8x128xf32>
    %28 = arith.addf %25, %27 : vector<8x128xf32>
    %29 = vector.extract_strided_slice %28 {offsets = [0, 0], sizes = [8, 4], strides = [1, 1]} : vector<8x128xf32> to vector<8x4xf32>
    %cst_19 = arith.constant dense<0xFF800000> : vector<8xf32>
    %30 = vector.multi_reduction <maximumf>, %29, %cst_19 [1] : vector<8x4xf32> to vector<8xf32>
    %31 = vector.shape_cast %30 : vector<8xf32> to vector<8x1xf32>
    %32 = vector.broadcast %31 : vector<8x1xf32> to vector<8x4xf32>
    %33 = arith.subf %29, %32 : vector<8x4xf32>
    %34 = math.exp %33 : vector<8x4xf32>
    %cst_20 = arith.constant dense<0.000000e+00> : vector<8xf32>
    %35 = vector.multi_reduction <add>, %34, %cst_20 [1] : vector<8x4xf32> to vector<8xf32>
    %36 = vector.shape_cast %35 : vector<8xf32> to vector<8x1xf32>
    %37 = vector.broadcast %36 : vector<8x1xf32> to vector<8x4xf32>
    %38 = arith.divf %34, %37 : vector<8x4xf32>
    %c0_21 = arith.constant 0 : index
    %c0_22 = arith.constant 0 : index
    %39 = vector.load %arg8[%c0_21, %c0_22] : memref<8x4xf32, #tpu.memory_space<vmem>>, vector<8x4xf32>
    tpu.vector_store %arg8[%c0_21, %c0_22], %38 {strides = array<i32>} : memref<8x4xf32, #tpu.memory_space<vmem>>, vector<8x4xf32>,
    return
  }
  func.func @transform_0(%arg0: i32) -> (i32, i32) {
    %c0_i32 = arith.constant 0 : i32
    %c0_i32_0 = arith.constant 0 : i32
    return %arg0, %c0_i32 : i32, i32
  }
  func.func @transform_1(%arg0: i32) -> (i32, i32) {
    %c0_i32 = arith.constant 0 : i32
    %c0_i32_0 = arith.constant 0 : i32
    %c0_i32_1 = arith.constant 0 : i32
    return %c0_i32, %c0_i32_0 : i32, i32
  }
  func.func @transform_2(%arg0: i32) -> (i32, i32) {
    %c0_i32 = arith.constant 0 : i32
    %c0_i32_0 = arith.constant 0 : i32
    %c0_i32_1 = arith.constant 0 : i32
    return %c0_i32, %c0_i32_0 : i32, i32
  }
  func.func @transform_3(%arg0: i32) -> (i32, i32) {
    %c0_i32 = arith.constant 0 : i32
    %c0_i32_0 = arith.constant 0 : i32
    %c0_i32_1 = arith.constant 0 : i32
    return %c0_i32, %c0_i32_0 : i32, i32
  }
  func.func @transform_4(%arg0: i32) -> (i32, i32) {
    %c0_i32 = arith.constant 0 : i32
    %c0_i32_0 = arith.constant 0 : i32
    %c0_i32_1 = arith.constant 0 : i32
    return %c0_i32, %c0_i32_0 : i32, i32
  }
  func.func @transform_5(%arg0: i32) -> (i32, i32) {
    %c0_i32 = arith.constant 0 : i32
    %c0_i32_0 = arith.constant 0 : i32
    %c0_i32_1 = arith.constant 0 : i32
    return %c0_i32, %c0_i32_0 : i32, i32
  }
  func.func @transform_6(%arg0: i32) -> (i32, i32) {
    %c0_i32 = arith.constant 0 : i32
    %c0_i32_0 = arith.constant 0 : i32
    %c0_i32_1 = arith.constant 0 : i32
    return %c0_i32, %c0_i32_0 : i32, i32
  }
  func.func @transform_7(%arg0: i32) -> (i32, i32) {
    %c0_i32 = arith.constant 0 : i32
    %c0_i32_0 = arith.constant 0 : i32
    return %arg0, %c0_i32 : i32, i32
  }
}

</mosaic_0001>

<bundles_post_ra>
// kernel: tpu_custom_call.1
= control target key start
LH: loop header
LB: loop body
LE: loop exit
PB: predicated region body
PF: predicated region fallthrough
CT: control target
= control target key end

     0   :  { %12 = vsyncpa [#allocation3], 0  ;;  %s714_s0 = inlined_call_operand.hbm [shape: f32[8,32], index: 0, kind: input, shape index: {}]   ;;  %s715_s1 = inlined_call_operand.hbm [shape: bf16[32,128], index: 1, kind: input, shape index: {}]   ;;  %s716_s2 = inlined_call_operand.vmem [shape: f32[1,128], index: 2, kind: input, shape index: {}]   ;;  %s717_s3 = inlined_call_operand.hbm [shape: bf16[128,128], index: 3, kind: input, shape index: {}]   ;;  %s718_s4 = inlined_call_operand.vmem [shape: f32[1,128], index: 4, kind: input, shape index: {}]   ;;  %s719_s5 = inlined_call_operand.hbm [shape: bf16[128,128], index: 5, kind: input, shape index: {}]   ;;  %s720_s6 = inlined_call_operand.vmem [shape: f32[1,128], index: 6, kind: input, shape index: {}]   ;;  %s721_s7 = inlined_call_operand.vmem [shape: f32[8,4], index: 7, kind: output, shape index: {}]  }
   0x1   :  { %13 = vsyncpa [#allocation5], 0 }
   0x2   :  { %14 = vsyncpa [#allocation8], 0  ;;  %s606_s24 = smov [#allocation4]  }
   0x3   :  { %s30_s25 = sshll.u32 %s606_s24, 4  ;;  %s31_s25 = int_to_ptr.vmem [resolvable:$true] %s30_s25 }
   0x4   :  { %s528_s26 = scalar_lea.vmem %s31_s25, 256  ;;  %p533_p1 = scmp.lt.s32.totalorder %s31_s25, %s31_s25 }
   0x5   :  { %p529_p0 = scmp.ne.s32.totalorder %s31_s25, %s528_s26  ;;  %p534_p2 = scmp.lt.s32.totalorder %s528_s26, %s528_s26 }
   0x7   :  { %p535_p3 = por %p534_p2, %p533_p1 }
   0x9   :  { %p536_p4 = pnand %p535_p3, %p529_p0 }
   0xb   :  { %539 = shalt.err (!%p536_p4)
}
   0xc   :  { %s607_s27 = smov 64   ;;  %s608_s28 = smov 4  }
   0xd   :  { %36 = dma.hbm_to_vmem [thread:$0]  %s715_s1, 256, %s31_s25, [#allocation5], %s607_s27, %s607_s27, %s608_s28  }
   0xe   :  { %s609_s8 = smov [#allocation2]   ;;  %s610_s10 = smov [#allocation6]  }
   0xf   :  { %s21_s9 = sshll.u32 %s609_s8, 4  ;;  %s44_s11 = sshll.u32 %s610_s10, 4  ;;  %s22_s9 = int_to_ptr.vmem [resolvable:$true] %s21_s9  ;;  %s45_s11 = int_to_ptr.vmem [resolvable:$true] %s44_s11 }
  0x10   :  { %s548_s12 = scalar_lea.vmem %s22_s9, 128  ;;  %p553_p6 = scmp.lt.s32.totalorder %s22_s9, %s22_s9 }
  0x11   :  { %p549_p5 = scmp.ne.s32.totalorder %s22_s9, %s548_s12  ;;  %p554_p7 = scmp.lt.s32.totalorder %s548_s12, %s548_s12 }
  0x13   :  { %p555_p8 = por %p554_p7, %p553_p6 }
  0x15   :  { %p556_p9 = pnand %p555_p8, %p549_p5 }
  0x17   :  { %559 = shalt.err (!%p556_p9)
}
  0x18   :  { %24 = dma.hbm_to_vmem [thread:$0]  %s714_s0, 128, %s22_s9, [#allocation3]  }
  0x19   :  { %s568_s15 = scalar_lea.vmem %s45_s11, 1024  ;;  %p573_p11 = scmp.lt.s32.totalorder %s45_s11, %s45_s11 }
  0x1a   :  { %p569_p10 = scmp.ne.s32.totalorder %s45_s11, %s568_s15  ;;  %p574_p12 = scmp.lt.s32.totalorder %s568_s15, %s568_s15 }
  0x1c   :  { %p575_p13 = por %p574_p12, %p573_p11 }
  0x1e   :  { %p576_p0 = pnand %p575_p13, %p569_p10 }
  0x20   :  { %579 = shalt.err (!%p576_p0)
}
  0x21   :  { %50 = dma.hbm_to_vmem [thread:$0]  %s717_s3, 1024, %s45_s11, [#allocation5], %s607_s27, %s607_s27, %s608_s28  }
  0x22   :  { %s611_s17 = smov [#allocation7]  }
  0x23   :  { %s58_s18 = sshll.u32 %s611_s17, 4  ;;  %s59_s18 = int_to_ptr.vmem [resolvable:$true] %s58_s18 }
  0x24   :  { %s588_s19 = scalar_lea.vmem %s59_s18, 1024  ;;  %p593_p2 = scmp.lt.s32.totalorder %s59_s18, %s59_s18 }
  0x25   :  { %p589_p1 = scmp.ne.s32.totalorder %s59_s18, %s588_s19  ;;  %p594_p3 = scmp.lt.s32.totalorder %s588_s19, %s588_s19 }
  0x27   :  { %p595_p4 = por %p594_p3, %p593_p2 }
  0x29   :  { %p596_p5 = pnand %p595_p4, %p589_p1 }
  0x2b   :  { %599 = shalt.err (!%p596_p5)
}
  0x2c   :  { %64 = dma.hbm_to_vmem [thread:$0]  %s719_s5, 1024, %s59_s18, [#allocation8], %s607_s27, %s607_s27, %s608_s28  }
  0x2d   :  { %600 = dma.done.wait [#allocation3], 128  }
  0x2e   :  { %601 = vsyncadd [#allocation3], 4294967168 }
  0x2f   :  { %602 = dma.done.wait [#allocation5], 1280  }
  0x30   :  { %603 = vsyncadd [#allocation5], 4294966016 }
  0x31   :  { %604 = dma.done.wait [#allocation8], 1024  }
  0x32   :  { %605 = vsyncadd [#allocation8], 4294966272  ;;  %v612_v0 = vmov 0.0   ;;  %vm613_vm0 = vmmov 0   ;;  %v498_v1 = vld [vmem:[#allocation4 + $0x8] sm:$0xff]   ;;  %v499_v2 = vld [vmem:[#allocation4] sm:$0xff]  }
  0x33   :  { %442 = vmatprep.subr.bf16.mxu0 %v612_v0  ;;  %446 = vmatprep.mubr.msk.bf16.mxu0 %vm613_vm0, %v612_v0  ;;  %v80_v3 = vld [vmem:[#allocation2] sm:$0xff]  ;;  %v500_v4 = vld [vmem:[#allocation6 + $0x38] sm:$0xff]   ;;  %v501_v6 = vld [vmem:[#allocation6 + $0x30] sm:$0xff]   ;;  %vm105_vm1 = vcmask 261120   ;;  %vm379_vm4 = vcmask 31744  }
  0x34   :  { %450 = vmatprep.subr.bf16.mxu1 %v612_v0  ;;  %466 = vmatprep.mubr.msk.bf16.mxu1 %vm613_vm0, %v612_v0  ;;  %v81_v5 = vpack.c.bf16 %v80_v3, %v80_v3  ;;  %v502_v7 = vld [vmem:[#allocation6 + $0x28] sm:$0xff]   ;;  %v503_v8 = vld [vmem:[#allocation6 + $0x20] sm:$0xff]   ;;  %v504_v9 = vld [vmem:[#allocation6 + $0x18] sm:$0xff]  }
  0x35   :  { %443 = vmatpush3.bf16.msra.mxu0 %v498_v1  ;;  %451 = vmatpush3.bf16.msra.mxu1 %v500_v4  ;;  %v505_v10 = vld [vmem:[#allocation6 + $0x10] sm:$0xff]   ;;  %v506_v11 = vld [vmem:[#allocation6 + $0x8] sm:$0xff]   ;;  %v507_v12 = vld [vmem:[#allocation6] sm:$0xff]  }
  0x36   :  { %444 = vmatprep.subr.bf16.mxu0 %v612_v0  ;;  %452 = vmatprep.subr.bf16.mxu1 %v612_v0  ;;  %v508_v13 = vld [vmem:[#allocation7 + $0x38] sm:$0xff]   ;;  %v509_v14 = vld [vmem:[#allocation7 + $0x30] sm:$0xff]   ;;  %v510_v15 = vld [vmem:[#allocation7 + $0x28] sm:$0xff]  }
  0x37   :  { %v511_v16 = vld [vmem:[#allocation7 + $0x20] sm:$0xff]   ;;  %v512_v17 = vld [vmem:[#allocation7 + $0x18] sm:$0xff]   ;;  %v513_v18 = vld [vmem:[#allocation7 + $0x10] sm:$0xff]  }
  0x38   :  { %v399_v19 = vld [vmem:[%s716_s2] ss:$0 sm:$0xff]  ;;  %v515_v29 = vld [vmem:[#allocation7] sm:$0xff]  }
  0x39   :  { %445 = vmatpush3.bf16.msra.mxu0 %v499_v2  ;;  %453 = vmatpush3.bf16.msra.mxu1 %v501_v6  ;;  %v514_v28 = vld [vmem:[#allocation7 + $0x8] sm:$0xff]  }
  0x3a   :  { %470 = vmatprep.subr.bf16.mxu0 %v612_v0  ;;  %454 = vmatprep.subr.bf16.mxu1 %v612_v0  ;;  %v403_v30 = vld [vmem:[%s718_s4] ss:$0 sm:$0xff] }
  0x3b   :  { %v412_v39 = vld [vmem:[%s720_s6] ss:$0 sm:$0xff] }
  0x3c   :  { %447 = vmatmul.mubr.msk.bf16.vlgmr.msra.gmra.mxu0 %vm105_vm1, %v81_v5 }
  0x3d   :  { %486 = vmatprep.mubr.msk.bf16.mxu0 %vm613_vm0, %v612_v0  ;;  %455 = vmatpush3.bf16.msra.mxu1 %v502_v7 }
  0x3e   :  { %456 = vmatprep.subr.bf16.mxu1 %v612_v0  ;;  %471 = vmatpush3.bf16.msra.mxu0 %v508_v13 }
  0x3f   :  { %472 = vmatprep.subr.bf16.mxu0 %v612_v0 }
  0x41   :  { %457 = vmatpush3.bf16.msra.mxu1 %v503_v8 }
  0x42   :  { %458 = vmatprep.subr.bf16.mxu1 %v612_v0  ;;  %473 = vmatpush3.bf16.msra.mxu0 %v509_v14 }
  0x43   :  { %474 = vmatprep.subr.bf16.mxu0 %v612_v0 }
  0x45   :  { %459 = vmatpush3.bf16.msra.mxu1 %v504_v9 }
  0x46   :  { %460 = vmatprep.subr.bf16.mxu1 %v612_v0  ;;  %475 = vmatpush3.bf16.msra.mxu0 %v510_v15 }
  0x47   :  { %476 = vmatprep.subr.bf16.mxu0 %v612_v0 }
  0x49   :  { %461 = vmatpush3.bf16.msra.mxu1 %v505_v10 }
  0x4a   :  { %462 = vmatprep.subr.bf16.mxu1 %v612_v0  ;;  %477 = vmatpush3.bf16.msra.mxu0 %v511_v16 }
  0x4b   :  { %478 = vmatprep.subr.bf16.mxu0 %v612_v0 }
  0x4d   :  { %463 = vmatpush3.bf16.msra.mxu1 %v506_v11 }
  0x4e   :  { %464 = vmatprep.subr.bf16.mxu1 %v612_v0  ;;  %479 = vmatpush3.bf16.msra.mxu0 %v512_v17 }
  0x4f   :  { %480 = vmatprep.subr.bf16.mxu0 %v612_v0 }
  0x51   :  { %465 = vmatpush3.bf16.msra.mxu1 %v507_v12 }
  0x52   :  { %481 = vmatpush3.bf16.msra.mxu0 %v513_v18 }
  0x53   :  { %482 = vmatprep.subr.bf16.mxu0 %v612_v0 }
  0x56   :  { %483 = vmatpush3.bf16.msra.mxu0 %v514_v28 }
  0x57   :  { %484 = vmatprep.subr.bf16.mxu0 %v612_v0 }
  0x5a   :  { %485 = vmatpush3.bf16.msra.mxu0 %v515_v29 }
  0xfc   :  { %v143_v20 = vpop.f32.mrf.mxu0 }
  0xfd   :  { %v144_v21 = vadd.f32 %v399_v19, %v143_v20 }
  0xfe   :  { %v448_v22 = vpop.f32.mrf.mxu0 }
  0xff   :  { %vm149_vm2 = vcmp.gt.f32.partialorder %v144_v21, 0.0  ;;  %v150_v23 = vmul.f32 0.01, %v144_v21 }
 0x100   :  { %v146_v24 = vpop.f32.mrf.mxu0 }
 0x101   :  { %v151_v25 = vsel %vm149_vm2, %v144_v21, %v150_v23 }
 0x102   :  { %v449_v26 = vpop.f32.mrf.mxu0  ;;  %v152_v27 = vpack.c.bf16 %v151_v25, %v151_v25 }
 0x104   :  { %467 = vmatmul.mubr.bf16.vlgmr.msra.gmra.mxu1 %v152_v27 }
 0x1c4   :  { %v258_v31 = vpop.f32.mrf.mxu1 }
 0x1c5   :  { %v259_v32 = vadd.f32 %v403_v30, %v258_v31 }
 0x1c6   :  { %v468_v33 = vpop.f32.mrf.mxu1 }
 0x1c7   :  { %vm264_vm3 = vcmp.gt.f32.partialorder %v259_v32, 0.0  ;;  %v265_v34 = vmul.f32 0.01, %v259_v32 }
 0x1c8   :  { %v261_v35 = vpop.f32.mrf.mxu1 }
 0x1c9   :  { %v266_v36 = vsel %vm264_vm3, %v259_v32, %v265_v34 }
 0x1ca   :  { %v267_v37 = vpack.c.bf16 %v266_v36, %v266_v36  ;;  %v469_v38 = vpop.f32.mrf.mxu1 }
 0x1cc   :  { %487 = vmatmul.mubr.bf16.vlgmr.msra.gmra.mxu0 %v267_v37 }
 0x28c   :  { %v373_v40 = vpop.f32.mrf.mxu0 }
 0x28d   :  { %v374_v41 = vadd.f32 %v412_v39, %v373_v40 }
 0x28e   :  { %v488_v42 = vpop.f32.mrf.mxu0 }
 0x28f   :  { %v380_v43 = vsel %vm379_vm4, %v374_v41, -inf }
 0x290   :  { %381 = vmax.xlane.f32.xlu0 %v380_v43  ;;  %v376_v44 = vpop.f32.mrf.mxu0 }
 0x292   :  { %v489_v45 = vpop.f32.mrf.mxu0 }
 0x319   :  { %v382_v46 = vpop.xlane.xlu0 %381 }
 0x31a   :  { %v383_v47 = vsub.f32 %v374_v41, %v382_v46 }
 0x31c   :  { %v384_v48 = vmul.f32 1.442695, %v383_v47 }
 0x31e   :  { %516 = vpow2.f32 %v384_v48 }
 0x32b   :  { %v517_v49 = vpop.eup %516 }
 0x32c   :  { %v386_v50 = vsel %vm379_vm4, %v517_v49, 0.0 }
 0x32d   :  { %387 = vadd.xlane.f32.xlu0 %v386_v50 }
 0x3b6   :  { %v388_v51 = vpop.xlane.xlu0 %387 }
 0x3b7   :  { %518 = vrcp.f32 %v388_v51 }
 0x3c4   :  { %v519_v52 = vpop.eup %518 }
 0x3c5   :  { %v390_v53 = vmul.f32 %v519_v52, %v517_v49 }
 0x3c7   :  { %391 = vst.msk [vmem:[%s721_s7] sm:$0xff] %vm379_vm4, %v390_v53 }
 0x3c8   :  { %396 = vsyncpa [#allocation3], 1 }
 0x3c9   :  { %397 = vsyncpa [#allocation5], 1 }
 0x3ca   :  { %398 = vsyncpa [#allocation8], 1 }

</bundles_post_ra>
